<compile_context>
chip_gen: v5e
topology: v5e:2x2
jax: 0.10.0
libtpu: 0.0.40
codegen_flags: <defaults>
</compile_context>

<pallas_src>
import numpy as np
import jax
import jax.numpy as jnp
from jax.experimental import pallas as pl
from jax.experimental.pallas import tpu as pltpu

ROW_W = 1024        # slab lane width (multiple of 128 -> wide, unmasked stores)
MAX_TILE_R = 512    # rows per grid step -> up to 512*1024*4 B = 2 MiB per block
SUBLANES = 8


def _round_up(x, m):
    return ((x + m - 1) // m) * m


def _make_ema_kernel(one_minus_decay):
    one_minus_decay = float(one_minus_decay)

    def kernel(ema_ref, model_ref, scale_ref, out_ref):
        e = ema_ref[...]
        m = model_ref[...]
        new_e = e - one_minus_decay * (e - m)      # == decay*e + (1-decay)*m
        # Per-row unbias factor (TILE_R, 1) broadcasts across the 1024 lanes.
        out_ref[...] = new_e * scale_ref[...]

    return kernel


def _build_pallas_update(rows, tile_r, one_minus_decay):
    grid = (rows // tile_r,)
    return pl.pallas_call(
        _make_ema_kernel(one_minus_decay),
        out_shape=jax.ShapeDtypeStruct((rows, ROW_W), jnp.float32),
        grid=grid,
        in_specs=[
            pl.BlockSpec((tile_r, ROW_W), lambda i: (i, 0)),   # ema slab
            pl.BlockSpec((tile_r, ROW_W), lambda i: (i, 0)),   # model slab
            pl.BlockSpec((tile_r, 1), lambda i: (i, 0)),       # per-row scale
        ],
        out_specs=pl.BlockSpec((tile_r, ROW_W), lambda i: (i, 0)),
        input_output_aliases={0: 0},   # update EMA slab in place in HBM
        compiler_params=pltpu.CompilerParams(
            dimension_semantics=("parallel",),
            # 3 slab buffers x 2-deep pipelining x 2 MiB ~= 12-13 MiB; 32 MiB
            # is safely above that on every generation (incl. v7x 64 MiB phys)
            # and above v5e's 16 MiB default scoped limit.
            vmem_limit_bytes=32 * 1024 * 1024,
        ),
    )


class EMA:
    """JAX/Pallas port of the PyTorch `ema` module (forward pass only).

    Parameters are plain dicts of arrays (state_dict analogue).
    # TODO(synk): deepcopy / nn.Module state_dict / load_state_dict plumbing
    # has no Pallas equivalent; parameters are explicit {name: array} dicts
    # and the EMA state is kept as a flat f32 slab.
    """

    def __init__(self, model_params, decay_rate, zero_unbias=False):
        self.decay_rate = float(decay_rate)
        self.zero_unbias = bool(zero_unbias)
        if self.zero_unbias:
            self.updates = 15

        # Static slab layout (computed once; each param padded to whole rows).
        self.param_keys = list(model_params.keys())
        self.shapes = {k: tuple(np.shape(model_params[k])) for k in self.param_keys}
        self.dtypes = {k: jnp.asarray(model_params[k]).dtype for k in self.param_keys}
        self.sizes = {k: int(np.prod(self.shapes[k])) if self.shapes[k] else 1
                      for k in self.param_keys}
        self.rows_per_param = [max(1, _round_up(self.sizes[k], ROW_W) // ROW_W)
                               for k in self.param_keys]
        rows_raw = sum(self.rows_per_param)
        self.tile_r = min(MAX_TILE_R, _round_up(rows_raw, SUBLANES))
        self.rows = _round_up(rows_raw, self.tile_r)
        offs = np.cumsum([0] + self.rows_per_param[:-1]).tolist()
        self.row_offsets = dict(zip(self.param_keys, offs))

        # "deepcopy(model)" analogue: EMA state starts as a copy of the given
        # params, stored permanently in flat slab form.
        self.ema_flat = self._flatten_to_slab(model_params)

        pallas_update = _build_pallas_update(self.rows, self.tile_r,
                                             1.0 - self.decay_rate)

        def _update(ema_flat, scale_rows, model_params_):
            model_flat = self._flatten_to_slab(model_params_)
            return pallas_update(ema_flat, model_flat, scale_rows)

        # Donate the old EMA slab so the aliased pallas output reuses its HBM.
        self._update = jax.jit(_update, donate_argnums=(0,))

    # ---- slab <-> dict plumbing -------------------------------------------
    def _flatten_to_slab(self, params):
        pieces = []
        for k, nrows in zip(self.param_keys, self.rows_per_param):
            v = jnp.ravel(jnp.asarray(params[k])).astype(jnp.float32)
            pad = nrows * ROW_W - v.shape[0]
            pieces.append(jnp.pad(v, (0, pad)))
        flat = jnp.concatenate(pieces)
        total = self.rows * ROW_W
        if flat.shape[0] < total:
            flat = jnp.pad(flat, (0, total - flat.shape[0]))
        return flat.reshape(self.rows, ROW_W)

    def _next_scale_rows(self):
        # Mirrors the PyTorch per-parameter `updates` increment and the
        # in-place divide by (1 - decay ** updates) while updates < 100.
        scales = np.ones((self.rows, 1), np.float32)
        if self.zero_unbias:
            off = 0
            for nrows in self.rows_per_param:
                self.updates += 1
                if self.updates < 100:
                    scales[off:off + nrows, 0] = (
                        1.0 / (1.0 - self.decay_rate ** self.updates))
                off += nrows
        return jnp.asarray(scales)

    # ---- module API --------------------------------------------------------
    def forward(self, model_params):
        scale_rows = self._next_scale_rows()
        self.ema_flat = self._update(self.ema_flat, scale_rows, model_params)
        return None  # matches PyTorch: state updated in place

    __call__ = forward

    def get_ema(self):
        """Lazily unflatten the EMA slab back to a {name: array} dict."""
        flat = self.ema_flat.reshape(-1)
        out = {}
        for k in self.param_keys:
            start = self.row_offsets[k] * ROW_W
            sz = self.sizes[k]
            out[k] = flat[start:start + sz].reshape(self.shapes[k]).astype(self.dtypes[k])
        return out

    def set_model_to_ema(self, model_params):
        # TODO(synk): load_state_dict has no Pallas equivalent; return a new
        # dict with the EMA values for the caller to use as model params.
        return self.get_ema()


if __name__ == "__main__":
    key = jax.random.PRNGKey(0)
    k1, k2, k3, k4, k5 = jax.random.split(key, 5)

    # Synthetic "basic model" state_dict: a small conv + linear network.
    model_params = {
        "conv.weight": jax.random.normal(k1, (4, 4, 3, 3), jnp.float32),
        "conv.bias":   jax.random.normal(k2, (4,), jnp.float32),
        "fc.weight":   jax.random.normal(k3, (32, 16), jnp.float32),
        "fc.bias":     jax.random.normal(k4, (32,), jnp.float32),
    }
    # EMA initialized from a perturbed copy so the update visibly changes values.
    init_ema_params = {
        k: v + 0.1 * jax.random.normal(jax.random.fold_in(k5, i), v.shape, v.dtype)
        for i, (k, v) in enumerate(model_params.items())
    }

    decay = 0.99
    ema_mod = EMA(init_ema_params, decay_rate=decay, zero_unbias=True)

    n_steps = 2
    for _ in range(n_steps):
        ema_mod(model_params)
    jax.block_until_ready(ema_mod.ema_flat)

    updated = ema_mod.get_ema()
    jax.block_until_ready(jax.tree_util.tree_leaves(updated))

    # Pure-JAX reference of the PyTorch semantics (per-parameter `updates`
    # increment; compounding in-place unbias divide).
    ref = {k: jnp.asarray(v) for k, v in init_ema_params.items()}
    updates = 15
    for _ in range(n_steps):
        for k in model_params:
            updates += 1
            e = ref[k]
            e = e - (1.0 - decay) * (e - model_params[k])
            if updates < 100:
                e = e / (1.0 - decay ** updates)
            ref[k] = e

    ok = all(
        bool(jnp.allclose(updated[k], ref[k], rtol=1e-5, atol=1e-5))
        for k in model_params
    )
    if ok:
        print("KERNEL_OK")
    else:
        raise SystemExit("mismatch vs reference")
</pallas_src>

<mosaic_0001>
module attributes {stable_mosaic.version = 11 : i64} {
  func.func @kernel(%arg0: i32, %arg1: memref<8x1024xf32, #tpu.memory_space<vmem>>, %arg2: memref<8x1024xf32, #tpu.memory_space<vmem>>, %arg3: memref<8x1xf32, #tpu.memory_space<vmem>>, %arg4: memref<8x1024xf32, #tpu.memory_space<vmem>>) attributes {dimension_semantics = [#tpu.dimension_semantics<parallel>], iteration_bounds = array<i64: 1>, scalar_prefetch = 0 : i64, scratch_operands = 0 : i64, tpu.core_type = #tpu.core_type<tc>, window_params = [{transform_indices = @transform_0, window_bounds = array<i64: 8, 1024>}, {transform_indices = @transform_1, window_bounds = array<i64: 8, 1024>}, {transform_indices = @transform_2, window_bounds = array<i64: 8, 1>}, {transform_indices = @transform_3, window_bounds = array<i64: 8, 1024>}]} {
    %c0 = arith.constant 0 : index
    %c0_0 = arith.constant 0 : index
    %0 = vector.load %arg1[%c0, %c0_0] : memref<8x1024xf32, #tpu.memory_space<vmem>>, vector<8x1024xf32>
    %c0_1 = arith.constant 0 : index
    %c0_2 = arith.constant 0 : index
    %1 = vector.load %arg2[%c0_1, %c0_2] : memref<8x1024xf32, #tpu.memory_space<vmem>>, vector<8x1024xf32>
    %2 = arith.subf %0, %1 : vector<8x1024xf32>
    %cst = arith.constant 0.00999999977 : f32
    %3 = vector.broadcast %cst : f32 to vector<8x1024xf32>
    %4 = arith.mulf %3, %2 : vector<8x1024xf32>
    %5 = arith.subf %0, %4 : vector<8x1024xf32>
    %c0_3 = arith.constant 0 : index
    %c0_4 = arith.constant 0 : index
    %6 = vector.load %arg3[%c0_3, %c0_4] : memref<8x1xf32, #tpu.memory_space<vmem>>, vector<8x1xf32>
    %7 = vector.broadcast %6 : vector<8x1xf32> to vector<8x1024xf32>
    %8 = arith.mulf %5, %7 : vector<8x1024xf32>
    %c0_5 = arith.constant 0 : index
    %c0_6 = arith.constant 0 : index
    %9 = vector.load %arg4[%c0_5, %c0_6] : memref<8x1024xf32, #tpu.memory_space<vmem>>, vector<8x1024xf32>
    tpu.vector_store %arg4[%c0_5, %c0_6], %8 {strides = array<i32>} : memref<8x1024xf32, #tpu.memory_space<vmem>>, vector<8x1024xf32>,
    return
  }
  func.func @transform_0(%arg0: i32) -> (i32, i32) {
    %c0_i32 = arith.constant 0 : i32
    %c0_i32_0 = arith.constant 0 : i32
    return %arg0, %c0_i32 : i32, i32
  }
  func.func @transform_1(%arg0: i32) -> (i32, i32) {
    %c0_i32 = arith.constant 0 : i32
    %c0_i32_0 = arith.constant 0 : i32
    return %arg0, %c0_i32 : i32, i32
  }
  func.func @transform_2(%arg0: i32) -> (i32, i32) {
    %c0_i32 = arith.constant 0 : i32
    %c0_i32_0 = arith.constant 0 : i32
    return %arg0, %c0_i32 : i32, i32
  }
  func.func @transform_3(%arg0: i32) -> (i32, i32) {
    %c0_i32 = arith.constant 0 : i32
    %c0_i32_0 = arith.constant 0 : i32
    return %arg0, %c0_i32 : i32, i32
  }
}

</mosaic_0001>

<bundles_post_ra>
// kernel: _update.1
= control target key start
LH: loop header
LB: loop body
LE: loop exit
PB: predicated region body
PF: predicated region fallthrough
CT: control target
= control target key end

     0   :  { %8 = vsyncpa [#allocation3], 0  ;;  %s220_s0 = inlined_call_operand.hbm [shape: f32[8,1024], index: 0, kind: input, shape index: {}, may-alias: {0,3}]   ;;  %s221_s1 = inlined_call_operand.vmem [shape: f32[8,1024], index: 1, kind: input, shape index: {}]   ;;  %s222_s2 = inlined_call_operand.vmem [shape: f32[8,1], index: 2, kind: input, shape index: {}]   ;;  %s223_s3 = inlined_call_operand.hbm [shape: f32[8,1024], index: 3, kind: output, shape index: {}, may-alias: {0,3}]  }
   0x1   :  { %9 = vsyncpa [#allocation4], 0  ;;  %s15_s14 = sshll.u32 %s220_s0, 4  ;;  %s164_s15 = smov [#allocation2]   ;;  %s16_s14 = int_to_ptr.hbm [resolvable:$true] %s15_s14 }
   0x2   :  { %s17_s16 = sshll.u32 %s164_s15, 4  ;;  %s18_s16 = int_to_ptr.vmem [resolvable:$true] %s17_s16 }
   0x3   :  { %20 = dma.hbm_to_vmem [thread:$0]  %s16_s14, 1024, %s18_s16, [#allocation3]  }
   0x4   :  { %160 = dma.done.wait [#allocation3], 1024  }
   0x5   :  { %161 = vsyncadd [#allocation3], 4294966272  ;;  %v165_v0 = vmov 0   ;;  %v69_v1 = vld [vmem:[%s222_s2] sm:$0xff]  ;;  %v30_v3 = vld [vmem:[#allocation2 + $0x8] sm:$0xff]  ;;  %s98_s9 = sshll.u32 %s223_s3, 4  ;;  %s99_s9 = int_to_ptr.hbm [resolvable:$true] %s98_s9 }
   0x6   :  { %111 = vset.pattern.permute.xlu0 %v165_v0  ;;  %v29_v2 = vld [vmem:[#allocation2] sm:$0xff]  ;;  %v31_v4 = vld [vmem:[#allocation2 + $0x10] sm:$0xff]  ;;  %v38_v6 = vld [vmem:[%s221_s1 + $0x8] sm:$0xff] }
   0x7   :  { %72 = vperm.xlu0 %111, %v69_v1   ;;  %v37_v5 = vld [vmem:[%s221_s1] sm:$0xff]  ;;  %v39_v7 = vld [vmem:[%s221_s1 + $0x10] sm:$0xff]  ;;  %v32_v8 = vld [vmem:[#allocation2 + $0x18] sm:$0xff]  ;;  %v46_v15 = vsub.f32 %v30_v3, %v38_v6 }
   0x8   :  { %v40_v9 = vld [vmem:[%s221_s1 + $0x18] sm:$0xff]  ;;  %v33_v10 = vld [vmem:[#allocation2 + $0x20] sm:$0xff]  ;;  %v34_v12 = vld [vmem:[#allocation2 + $0x28] sm:$0xff]  ;;  %v45_v14 = vsub.f32 %v29_v2, %v37_v5  ;;  %v47_v16 = vsub.f32 %v31_v4, %v39_v7 }
   0x9   :  { %v41_v11 = vld [vmem:[%s221_s1 + $0x20] sm:$0xff]  ;;  %v42_v13 = vld [vmem:[%s221_s1 + $0x28] sm:$0xff]  ;;  %v35_v17 = vld [vmem:[#allocation2 + $0x30] sm:$0xff]  ;;  %v48_v19 = vsub.f32 %v32_v8, %v40_v9  ;;  %v54_v26 = vmul.f32 0.01, %v46_v15 }
   0xa   :  { %v43_v18 = vld [vmem:[%s221_s1 + $0x30] sm:$0xff]  ;;  %v36_v20 = vld [vmem:[#allocation2 + $0x38] sm:$0xff]  ;;  %v49_v22 = vsub.f32 %v33_v10, %v41_v11  ;;  %v50_v23 = vsub.f32 %v34_v12, %v42_v13  ;;  %v53_v25 = vmul.f32 0.01, %v45_v14  ;;  %v55_v27 = vmul.f32 0.01, %v47_v16 }
   0xb   :  { %v44_v21 = vld [vmem:[%s221_s1 + $0x38] sm:$0xff]  ;;  %v51_v24 = vsub.f32 %v35_v17, %v43_v18  ;;  %v56_v29 = vmul.f32 0.01, %v48_v19  ;;  %v62_v34 = vsub.f32 %v30_v3, %v54_v26  ;;  %s166_s1 = smov [#allocation5]  }
   0xc   :  { %v52_v28 = vsub.f32 %v36_v20, %v44_v21  ;;  %v57_v30 = vmul.f32 0.01, %v49_v22  ;;  %v58_v31 = vmul.f32 0.01, %v50_v23  ;;  %v61_v33 = vsub.f32 %v29_v2, %v53_v25  ;;  %s96_s6 = sshll.u32 %s166_s1, 4  ;;  %s97_s6 = int_to_ptr.vmem [resolvable:$true] %s96_s6 }
   0xd   :  { %v59_v32 = vmul.f32 0.01, %v51_v24  ;;  %v63_v35 = vsub.f32 %v31_v4, %v55_v27  ;;  %v64_v37 = vsub.f32 %v32_v8, %v56_v29 }
   0xe   :  { %v60_v36 = vmul.f32 0.01, %v52_v28  ;;  %v65_v38 = vsub.f32 %v33_v10, %v57_v30  ;;  %v66_v40 = vsub.f32 %v34_v12, %v58_v31 }
   0xf   :  { %v67_v41 = vsub.f32 %v35_v17, %v59_v32 }
  0x10   :  { %v68_v45 = vsub.f32 %v36_v20, %v60_v36 }
  0x79   :  { %v73_v39 = vpop.permute.xlu0 %72 }
  0x7a   :  { %v75_v42 = vmul.f32 %v73_v39, %v61_v33  ;;  %v76_v43 = vmul.f32 %v73_v39, %v62_v34  ;;  %v77_v44 = vmul.f32 %v73_v39, %v63_v35  ;;  %v78_v46 = vmul.f32 %v73_v39, %v64_v37 }
  0x7b   :  { %v79_v47 = vmul.f32 %v73_v39, %v65_v38  ;;  %v80_v48 = vmul.f32 %v73_v39, %v66_v40  ;;  %v81_v49 = vmul.f32 %v73_v39, %v67_v41  ;;  %v82_v50 = vmul.f32 %v73_v39, %v68_v45 }
  0x7c   :  { %83 = vst [vmem:[#allocation5] sm:$0xff] %v75_v42 }
  0x7d   :  { %84 = vst [vmem:[#allocation5 + $0x8] sm:$0xff] %v76_v43 }
  0x7e   :  { %85 = vst [vmem:[#allocation5 + $0x10] sm:$0xff] %v77_v44 }
  0x7f   :  { %86 = vst [vmem:[#allocation5 + $0x18] sm:$0xff] %v78_v46 }
  0x80   :  { %87 = vst [vmem:[#allocation5 + $0x20] sm:$0xff] %v79_v47 }
  0x81   :  { %88 = vst [vmem:[#allocation5 + $0x28] sm:$0xff] %v80_v48 }
  0x82   :  { %89 = vst [vmem:[#allocation5 + $0x30] sm:$0xff] %v81_v49 }
  0x83   :  { %90 = vst [vmem:[#allocation5 + $0x38] sm:$0xff] %v82_v50 }
  0x84   :  { %101 = dma.vmem_to_hbm [thread:$0]  %s97_s6, 1024, %s99_s9, [#allocation4]  }
  0x85   :  { %162 = dma.done.wait [#allocation4], 1024  }
  0x86   :  { %163 = vsyncadd [#allocation4], 4294966272 }
  0x87   :  { %106 = vsyncpa [#allocation3], 1 }
  0x88   :  { %107 = vsyncpa [#allocation4], 1 }

</bundles_post_ra>
